<compile_context>
chip_gen: v7x
topology: tpu7x:2x2x1
jax: 0.10.0
libtpu: 0.0.40
codegen_flags: <defaults>
</compile_context>

<pallas_src>
import functools

import jax
import jax.numpy as jnp
from jax.experimental import pallas as pl
from jax.experimental.pallas import tpu as pltpu


def _ffn_kernel(x_ref, w1_ref, b1_ref, w2_ref, b2_ref, o_ref, *scratch,
                num_k, approx_gelu):
    # x_ref:  (tm, d_model)            (original dtype, cast to bf16 here)
    # w1_ref: (d_model, tk) bf16, b1_ref: (1, tk)
    # w2_ref: (tk, d_model) bf16, b2_ref: (1, d_model)
    # scratch: () if num_k == 1 else (acc_ref,) with acc_ref (tm, d_model) f32
    xb = x_ref[...].astype(jnp.bfloat16)

    # First linear on the MXU (bf16 x bf16 -> f32) + bias slice for this dim_ff tile.
    h = jnp.dot(xb, w1_ref[...], preferred_element_type=jnp.float32)
    h = h + b1_ref[...].astype(jnp.float32)

    if approx_gelu:
        # tanh approximation routes through the EUP slot (cheaper under fast bf16 MXU),
        # at the cost of small numerical deviation from torch's exact GELU.
        h = jax.nn.gelu(h, approximate=True)
    else:
        # Exact erf-based GELU (matches torch.nn.GELU default), in f32.
        h = 0.5 * h * (1.0 + jax.lax.erf(h * jnp.float32(0.7071067811865476)))

    # Second linear on the MXU: partial contribution of this dim_ff tile.
    partial = jnp.dot(h.astype(jnp.bfloat16), w2_ref[...],
                      preferred_element_type=jnp.float32)

    if num_k == 1:
        # Weight-resident fast path: single k step, no accumulator needed.
        o_ref[...] = (partial + b2_ref[...].astype(jnp.float32)).astype(o_ref.dtype)
    else:
        acc_ref = scratch[0]
        k = pl.program_id(1)

        @pl.when(k == 0)
        def _():
            acc_ref[...] = partial

        @pl.when(jnp.logical_and(k > 0, k < num_k - 1))
        def _():
            acc_ref[...] += partial

        @pl.when(k == num_k - 1)
        def _():
            o_ref[...] = (acc_ref[...] + partial
                          + b2_ref[...].astype(jnp.float32)).astype(o_ref.dtype)


def _pick_tk(dim_ff, tk_req):
    """k-tile needing no weight padding: full dim_ff if it fits the request,
    else the largest multiple-of-128 divisor of dim_ff <= tk_req, else full dim_ff."""
    if dim_ff <= tk_req:
        return dim_ff
    best = 0
    cand = 128
    while cand <= tk_req:
        if dim_ff % cand == 0:
            best = cand
        cand += 128
    return best if best > 0 else dim_ff


def _auto_vmem_limit(tm, tk, d_model, x_itemsize, out_itemsize, num_k):
    """Scoped VMEM limit from tile arithmetic (double-buffered blocks) + headroom."""
    x_blk = tm * d_model * x_itemsize
    w1_blk = d_model * tk * 2          # bf16
    w2_blk = tk * d_model * 2          # bf16
    b1_blk = tk * 4
    b2_blk = d_model * 4
    out_blk = tm * d_model * out_itemsize
    need = 2 * (x_blk + w1_blk + w2_blk + b1_blk + b2_blk + out_blk)
    if num_k > 1:
        need += tm * d_model * 4       # f32 accumulator scratch
    # +8 MiB headroom for compiler internal scratch; cap keeps v5e/v6e happy and the
    # need-based value stays under v7x's 64 MiB as long as the tiles themselves fit.
    return int(min(max(need + (8 << 20), 32 << 20), 100 << 20))


def prepare_params(w1, b1, w2, b2):
    """One-time parameter prep OUTSIDE the jitted hot path: bf16 weights, (1, n) biases."""
    return (w1.astype(jnp.bfloat16), jnp.asarray(b1).reshape(1, -1),
            w2.astype(jnp.bfloat16), jnp.asarray(b2).reshape(1, -1))


@functools.partial(jax.jit,
                   static_argnames=("tm", "tk", "approx_gelu", "vmem_limit_bytes"))
def feed_forward(x, w1, b1, w2, b2, *, tm=512, tk=1024, approx_gelu=False,
                 vmem_limit_bytes=None):
    """x: (..., d_model) -> (..., d_model). Fused Linear->GELU->Linear in one kernel."""
    orig_shape = x.shape
    d_model = orig_shape[-1]
    dim_ff = w1.shape[1]

    # bf16 weight path (no-op casts when params were prepared via prepare_params).
    w1 = w1.astype(jnp.bfloat16)
    w2 = w2.astype(jnp.bfloat16)
    b1 = b1.reshape(1, dim_ff)
    b2 = b2.reshape(1, d_model)

    x2d = x.reshape(-1, d_model)
    m = x2d.shape[0]

    # Row tile: full M (rounded up to a sublane multiple) for small problems, else tm.
    if m <= tm:
        tm_eff = max(8, ((m + 7) // 8) * 8)
    else:
        tm_eff = tm
    m_pad = ((m + tm_eff - 1) // tm_eff) * tm_eff
    if m_pad != m:
        x2d = jnp.pad(x2d, ((0, m_pad - m), (0, 0)))   # rows only; weights untouched

    tk_eff = _pick_tk(dim_ff, tk)
    num_k = dim_ff // tk_eff
    grid = (m_pad // tm_eff, num_k)

    if vmem_limit_bytes is None:
        vmem_limit_bytes = _auto_vmem_limit(
            tm_eff, tk_eff, d_model, x2d.dtype.itemsize, x.dtype.itemsize, num_k)

    scratch_shapes = ([pltpu.VMEM((tm_eff, d_model), jnp.float32)]
                      if num_k > 1 else [])

    kernel = functools.partial(_ffn_kernel, num_k=num_k, approx_gelu=approx_gelu)

    out = pl.pallas_call(
        kernel,
        out_shape=jax.ShapeDtypeStruct((m_pad, d_model), x.dtype),
        grid_spec=pltpu.PrefetchScalarGridSpec(
            num_scalar_prefetch=0,
            grid=grid,
            in_specs=[
                pl.BlockSpec((tm_eff, d_model), lambda i, k: (i, 0)),   # x row tile
                pl.BlockSpec((d_model, tk_eff), lambda i, k: (0, k)),   # W1 dim_ff tile
                pl.BlockSpec((1, tk_eff), lambda i, k: (0, k)),         # b1 slice
                pl.BlockSpec((tk_eff, d_model), lambda i, k: (k, 0)),   # W2 dim_ff tile
                pl.BlockSpec((1, d_model), lambda i, k: (0, 0)),        # b2
            ],
            out_specs=pl.BlockSpec((tm_eff, d_model), lambda i, k: (i, 0)),
            scratch_shapes=scratch_shapes,
        ),
        compiler_params=pltpu.CompilerParams(
            dimension_semantics=("parallel", "arbitrary"),
            vmem_limit_bytes=vmem_limit_bytes,
        ),
    )(x2d, w1, b1, w2, b2)

    if m_pad != m:
        out = out[:m]
    return out.reshape(orig_shape)


def init_params(key, d_model, dim_feedforward, dtype=jnp.float32):
    """nn.Linear-style init; weights stored (in, out), biases 1-D like PyTorch."""
    k1, k2, k3, k4 = jax.random.split(key, 4)
    bound1 = 1.0 / (d_model ** 0.5)
    bound2 = 1.0 / (dim_feedforward ** 0.5)
    w1 = jax.random.uniform(k1, (d_model, dim_feedforward), dtype, -bound1, bound1)
    b1 = jax.random.uniform(k2, (dim_feedforward,), dtype, -bound1, bound1)
    w2 = jax.random.uniform(k3, (dim_feedforward, d_model), dtype, -bound2, bound2)
    b2 = jax.random.uniform(k4, (d_model,), dtype, -bound2, bound2)
    return w1, b1, w2, b2


@jax.jit
def _reference(x, w1, b1, w2, b2):
    """Pure-JAX reference with the same bf16-operand / f32-accumulate numerics."""
    d_model = x.shape[-1]
    xb = x.reshape(-1, d_model).astype(jnp.bfloat16)
    h = jnp.dot(xb, w1.astype(jnp.bfloat16), preferred_element_type=jnp.float32)
    h = h + b1.reshape(1, -1).astype(jnp.float32)
    h = 0.5 * h * (1.0 + jax.lax.erf(h * jnp.float32(0.7071067811865476)))
    out = jnp.dot(h.astype(jnp.bfloat16), w2.astype(jnp.bfloat16),
                  preferred_element_type=jnp.float32)
    out = out + b2.reshape(1, -1).astype(jnp.float32)
    return out.reshape(x.shape).astype(x.dtype)


if __name__ == "__main__":
    key = jax.random.PRNGKey(0)

    # Case 1: tiny, raw f32 params, single tile in both grid axes (resident-weight path).
    batch, seq, d_model, dim_ff = 2, 8, 32, 64
    kx, kp, key = jax.random.split(key, 3)
    x = jax.random.normal(kx, (batch, seq, d_model), dtype=jnp.float32)
    w1, b1, w2, b2 = init_params(kp, d_model, dim_ff)
    out = jax.block_until_ready(feed_forward(x, w1, b1, w2, b2))
    ref = _reference(x, w1, b1, w2, b2)
    assert out.shape == (batch, seq, d_model)
    assert jnp.allclose(out, ref, atol=1e-2, rtol=1e-2), "mismatch vs reference (small)"

    # Case 2: prepared bf16 params, weight-resident single-k path, one 512-row tile.
    batch2, seq2, d_model2, dim_ff2 = 4, 128, 128, 512
    kx2, kp2, key = jax.random.split(key, 3)
    x2 = jax.random.normal(kx2, (batch2, seq2, d_model2), dtype=jnp.float32)
    p2 = prepare_params(*init_params(kp2, d_model2, dim_ff2))
    out2 = jax.block_until_ready(feed_forward(x2, *p2))
    ref2 = _reference(x2, *p2)
    assert out2.shape == (batch2, seq2, d_model2)
    assert jnp.allclose(out2, ref2, atol=1e-2, rtol=1e-2), "mismatch vs reference (resident)"

    # Case 3: multi-row-tile and multi-k accumulation path.
    batch3, seq3, d_model3, dim_ff3 = 2, 256, 128, 1024
    kx3, kp3 = jax.random.split(key)
    x3 = jax.random.normal(kx3, (batch3, seq3, d_model3), dtype=jnp.float32)
    p3 = prepare_params(*init_params(kp3, d_model3, dim_ff3))
    out3 = jax.block_until_ready(feed_forward(x3, *p3, tm=256, tk=256))
    ref3 = _reference(x3, *p3)
    assert out3.shape == (batch3, seq3, d_model3)
    assert jnp.allclose(out3, ref3, atol=1e-2, rtol=1e-2), "mismatch vs reference (tiled)"

    print("KERNEL_OK")
</pallas_src>

<mosaic_0001>
module attributes {stable_mosaic.version = 11 : i64} {
  func.func @_ffn_kernel(%arg0: i32, %arg1: i32, %arg2: memref<16x32xf32, #tpu.memory_space<vmem>>, %arg3: memref<32x64xbf16, #tpu.memory_space<vmem>>, %arg4: memref<1x64xf32, #tpu.memory_space<vmem>>, %arg5: memref<64x32xbf16, #tpu.memory_space<vmem>>, %arg6: memref<1x32xf32, #tpu.memory_space<vmem>>, %arg7: memref<16x32xf32, #tpu.memory_space<vmem>>) attributes {dimension_semantics = [#tpu.dimension_semantics<parallel>, #tpu.dimension_semantics<arbitrary>], iteration_bounds = array<i64: 1, 1>, scalar_prefetch = 0 : i64, scratch_operands = 0 : i64, tpu.core_type = #tpu.core_type<tc>, window_params = [{transform_indices = @transform_0, window_bounds = array<i64: 16, 32>}, {transform_indices = @transform_1, window_bounds = array<i64: 32, 64>}, {transform_indices = @transform_2, window_bounds = array<i64: 1, 64>}, {transform_indices = @transform_3, window_bounds = array<i64: 64, 32>}, {pipeline_mode = #tpu.pipeline_mode<synchronous>, transform_indices = @transform_4, window_bounds = array<i64: 1, 32>}, {transform_indices = @transform_5, window_bounds = array<i64: 16, 32>}]} {
    %c0 = arith.constant 0 : index
    %c0_0 = arith.constant 0 : index
    %0 = vector.load %arg2[%c0, %c0_0] : memref<16x32xf32, #tpu.memory_space<vmem>>, vector<16x32xf32>
    %1 = arith.truncf %0 : vector<16x32xf32> to vector<16x32xbf16>
    %c0_1 = arith.constant 0 : index
    %c0_2 = arith.constant 0 : index
    %2 = vector.load %arg3[%c0_1, %c0_2] : memref<32x64xbf16, #tpu.memory_space<vmem>>, vector<32x64xbf16>
    %cst = arith.constant dense<0.000000e+00> : vector<16x64xf32>
    %3 = tpu.matmul %1, %2, %cst {dimension_numbers = #tpu.dot_dimension_numbers<[1], [0], [0], [1], [0, 0, 1, 1], [], []>} : vector<16x32xbf16>, vector<32x64xbf16>, vector<16x64xf32> -> vector<16x64xf32>
    %c0_3 = arith.constant 0 : index
    %c0_4 = arith.constant 0 : index
    %4 = vector.load %arg4[%c0_3, %c0_4] : memref<1x64xf32, #tpu.memory_space<vmem>>, vector<1x64xf32>
    %5 = vector.broadcast %4 : vector<1x64xf32> to vector<16x64xf32>
    %6 = arith.addf %3, %5 : vector<16x64xf32>
    %cst_5 = arith.constant 5.000000e-01 : f32
    %7 = vector.broadcast %cst_5 : f32 to vector<16x64xf32>
    %8 = arith.mulf %7, %6 : vector<16x64xf32>
    %cst_6 = arith.constant 0.707106769 : f32
    %9 = vector.broadcast %cst_6 : f32 to vector<16x64xf32>
    %10 = arith.mulf %6, %9 : vector<16x64xf32>
    %11 = math.erf %10 : vector<16x64xf32>
    %cst_7 = arith.constant 1.000000e+00 : f32
    %12 = vector.broadcast %cst_7 : f32 to vector<16x64xf32>
    %13 = arith.addf %12, %11 : vector<16x64xf32>
    %14 = arith.mulf %8, %13 : vector<16x64xf32>
    %15 = arith.truncf %14 : vector<16x64xf32> to vector<16x64xbf16>
    %c0_8 = arith.constant 0 : index
    %c0_9 = arith.constant 0 : index
    %16 = vector.load %arg5[%c0_8, %c0_9] : memref<64x32xbf16, #tpu.memory_space<vmem>>, vector<64x32xbf16>
    %cst_10 = arith.constant dense<0.000000e+00> : vector<16x32xf32>
    %17 = tpu.matmul %15, %16, %cst_10 {dimension_numbers = #tpu.dot_dimension_numbers<[1], [0], [0], [1], [0, 0, 1, 1], [], []>} : vector<16x64xbf16>, vector<64x32xbf16>, vector<16x32xf32> -> vector<16x32xf32>
    %c0_11 = arith.constant 0 : index
    %c0_12 = arith.constant 0 : index
    %18 = vector.load %arg6[%c0_11, %c0_12] : memref<1x32xf32, #tpu.memory_space<vmem>>, vector<1x32xf32>
    %19 = vector.broadcast %18 : vector<1x32xf32> to vector<16x32xf32>
    %20 = arith.addf %17, %19 : vector<16x32xf32>
    %c0_13 = arith.constant 0 : index
    %c0_14 = arith.constant 0 : index
    %21 = vector.load %arg7[%c0_13, %c0_14] : memref<16x32xf32, #tpu.memory_space<vmem>>, vector<16x32xf32>
    tpu.vector_store %arg7[%c0_13, %c0_14], %20 {strides = array<i32>} : memref<16x32xf32, #tpu.memory_space<vmem>>, vector<16x32xf32>,
    return
  }
  func.func @transform_0(%arg0: i32, %arg1: i32) -> (i32, i32) {
    %c0_i32 = arith.constant 0 : i32
    %c0_i32_0 = arith.constant 0 : i32
    return %arg0, %c0_i32 : i32, i32
  }
  func.func @transform_1(%arg0: i32, %arg1: i32) -> (i32, i32) {
    %c0_i32 = arith.constant 0 : i32
    %c0_i32_0 = arith.constant 0 : i32
    return %c0_i32, %arg1 : i32, i32
  }
  func.func @transform_2(%arg0: i32, %arg1: i32) -> (i32, i32) {
    %c0_i32 = arith.constant 0 : i32
    %c0_i32_0 = arith.constant 0 : i32
    return %c0_i32, %arg1 : i32, i32
  }
  func.func @transform_3(%arg0: i32, %arg1: i32) -> (i32, i32) {
    %c0_i32 = arith.constant 0 : i32
    %c0_i32_0 = arith.constant 0 : i32
    return %arg1, %c0_i32 : i32, i32
  }
  func.func @transform_4(%arg0: i32, %arg1: i32) -> (i32, i32) {
    %c0_i32 = arith.constant 0 : i32
    %c0_i32_0 = arith.constant 0 : i32
    %c0_i32_1 = arith.constant 0 : i32
    return %c0_i32, %c0_i32_0 : i32, i32
  }
  func.func @transform_5(%arg0: i32, %arg1: i32) -> (i32, i32) {
    %c0_i32 = arith.constant 0 : i32
    %c0_i32_0 = arith.constant 0 : i32
    return %arg0, %c0_i32 : i32, i32
  }
}

</mosaic_0001>

<bundles_post_ra>
// kernel: feed_forward.1
= control target key start
LH: loop header
LB: loop body
LE: loop exit
PB: predicated region body
PF: predicated region fallthrough
CT: control target
= control target key end

     0   :  { %v283_v1 = vmov 0.0   ;;  %vm284_vm0 = vmmov 0   ;;  %s363_s0 = inlined_call_operand.vmem [shape: f32[16,32], index: 0, kind: input, shape index: {}]   ;;  %s364_s1 = inlined_call_operand.vmem [shape: bf16[32,64], index: 1, kind: input, shape index: {}]   ;;  %s365_s2 = inlined_call_operand.vmem [shape: f32[1,64], index: 2, kind: input, shape index: {}]   ;;  %s366_s3 = inlined_call_operand.vmem [shape: bf16[64,32], index: 3, kind: input, shape index: {}]   ;;  %s367_s4 = inlined_call_operand.vmem [shape: f32[1,32], index: 4, kind: input, shape index: {}]   ;;  %s368_s5 = inlined_call_operand.hbm [shape: f32[16,32], index: 5, kind: output, shape index: {}]  }
   0x1   :  { %v249_v0 = vld [vmem:[%s364_s1] sm:$0xff]   ;;  %224 = vmatprep.subr.bf16.mxu0 %v283_v1  ;;  %232 = vmatprep.subr.bf16.mxu1 %v283_v1  ;;  %v250_v2 = vld [vmem:[%s364_s1 + $0x8] sm:$0xff]  }
   0x2   :  { %225 = vmatpush3.bf16.msra.mxu0 %v249_v0  ;;  %228 = vmatprep.mubr.msk.bf16.mxu0 %vm284_vm0, %v283_v1  ;;  %v22_v3 = vld [vmem:[%s363_s0] sm:$0xff]  ;;  %v23_v4 = vld [vmem:[%s363_s0 + $0x8] sm:$0xff] }
   0x3   :  { %226 = vmatprep.subr.bf16.mxu0 %v283_v1  ;;  %240 = vmatprep.mubr.msk.bf16.mxu1 %vm284_vm0, %v283_v1  ;;  %v24_v5 = vpack.c.bf16 %v23_v4, %v22_v3 }
   0x4   :  { %10 = vsyncpa [#allocation3], 0  ;;  %vm48_vm1 = vcmask 261120   ;;  %v251_v6 = vld [vmem:[%s366_s3] sm:$0xff]   ;;  %v252_v7 = vld [vmem:[%s366_s3 + $0x8] sm:$0xff]   ;;  %vm143_vm2 = vcmask 523264  }
   0x5   :  { %233 = vmatpush3.bf16.msra.mxu1 %v251_v6  ;;  %v253_v8 = vld [vmem:[%s366_s3 + $0x10] sm:$0xff]   ;;  %v254_v9 = vld [vmem:[%s366_s3 + $0x18] sm:$0xff]   ;;  %v206_v10 = vld [vmem:[%s365_s2] ss:$0 sm:$0xff]  ;;  %s285_s9 = smov [#allocation2]  }
   0x6   :  { %227 = vmatpush3.bf16.msra.mxu0 %v250_v2  ;;  %234 = vmatprep.subr.bf16.mxu1 %v283_v1  ;;  %v210_v28 = vld [vmem:[%s367_s4] ss:$0 sm:$0xff]  ;;  %s195_s10 = sshll.u32 %s285_s9, 4  ;;  %s196_s10 = int_to_ptr.vmem [resolvable:$true] %s195_s10 }
   0x7   :  { %s259_s11 = scalar_lea.vmem %s196_s10, 256  ;;  %p264_p1 = scmp.lt.s32.totalorder %s196_s10, %s196_s10 }
   0x8   :  { %p260_p0 = scmp.ne.s32.totalorder %s196_s10, %s259_s11  ;;  %p265_p2 = scmp.lt.s32.totalorder %s259_s11, %s259_s11 }
   0x9   :  { %229 = vmatmul.mubr.msk.bf16.vlgmr.msra.gmra.mrb[0].mxu0 %vm48_vm1, %v24_v5  ;;  %235 = vmatpush3.bf16.msra.mxu1 %v252_v7 }
   0xa   :  { %236 = vmatprep.subr.bf16.mxu1 %v283_v1  ;;  %p266_p3 = por %p265_p2, %p264_p1 }
   0xc   :  { %p267_p4 = pnand %p266_p3, %p260_p0 }
   0xd   :  { %237 = vmatpush3.bf16.msra.mxu1 %v253_v8 }
   0xe   :  { %238 = vmatprep.subr.bf16.mxu1 %v283_v1 }
  0x11   :  { %239 = vmatpush3.bf16.msra.mxu1 %v254_v9 }
  0xdc   :  { %v86_v11 = vpop.f32.mrb[0].mxu0 }
  0xdd   :  { %v87_v12 = vadd.f32 %v206_v10, %v86_v11  ;;  %v230_v13 = vpop.f32.mrb[1].mxu0 }
  0xde   :  { %v89_v14 = vpop.f32.mrb[2].mxu0 }
  0xdf   :  { %v95_v15 = vmul.f32 0.70710677, %v87_v12  ;;  %v90_v16 = vadd.f32 %v206_v10, %v89_v14  ;;  %v231_v17 = vpop.f32.mrb[3].mxu0  ;;  %v93_v22 = vmul.f32 0.5, %v87_v12 }
  0xe1   :  { %255 = verf.f32 %v95_v15  ;;  %v96_v18 = vmul.f32 0.70710677, %v90_v16  ;;  %v94_v23 = vmul.f32 0.5, %v90_v16 }
  0xe3   :  { %257 = verf.f32 %v96_v18 }
  0xeb   :  { %v256_v19 = vpop.eup %255 }
  0xec   :  { %v99_v20 = vadd.f32 1.0, %v256_v19 }
  0xed   :  { %v258_v21 = vpop.eup %257 }
  0xee   :  { %v100_v24 = vadd.f32 1.0, %v258_v21  ;;  %v101_v25 = vmul.f32 %v99_v20, %v93_v22 }
  0xf0   :  { %v102_v26 = vmul.f32 %v100_v24, %v94_v23 }
  0xf2   :  { %v103_v27 = vpack.c.bf16 %v102_v26, %v101_v25 }
  0xf4   :  { %241 = vmatmul.mubr.msk.bf16.vlgmr.msra.gmra.mrb[0].mxu1 %vm143_vm2, %v103_v27 }
 0x1c7   :  { %v181_v29 = vpop.f32.mrb[0].mxu1 }
 0x1c8   :  { %v182_v30 = vadd.f32 %v210_v28, %v181_v29  ;;  %v242_v31 = vpop.f32.mrb[1].mxu1 }
 0x1c9   :  { %v184_v32 = vpop.f32.mrb[2].mxu1 }
 0x1ca   :  { %188 = vst.msk [vmem:[#allocation2] sm:$0xff] %vm48_vm1, %v182_v30  ;;  %v185_v33 = vadd.f32 %v210_v28, %v184_v32  ;;  %v243_v34 = vpop.f32.mrb[3].mxu1 }
 0x1cc   :  { %189 = vst.msk [vmem:[#allocation2 + $0x8] sm:$0xff] %vm48_vm1, %v185_v33 }
 0x1cd   :  { %270 = shalt.err (!%p267_p4)
}
 0x1ce   :  { %s271_s13 = scalar_lea.hbm %s368_s5, 256 }
 0x1cf   :  { %p272_p5 = scmp.ne.s32.totalorder %s368_s5, %s271_s13  ;;  %p275_p6 = scmp.lt.u32.totalorder %s271_s13, %s368_s5 }
 0x1d1   :  { %p277_p7 = pnand %p275_p6, %p272_p5 }
 0x1d3   :  { %280 = shalt.err (!%p277_p7)
}
 0x1d4   :  { %s286_s18 = smov 128   ;;  %s287_s19 = smov 8  }
 0x1d5   :  { %201 = dma.vmem_to_hbm [thread:$0]  %s196_s10, 256, %s368_s5, [#allocation3], %s286_s18, %s286_s18, %s287_s19  }
 0x1d6   :  { %281 = dma.done.wait [#allocation3], 256  }
 0x1d7   :  { %282 = vsyncadd [#allocation3], 4294967040 }
 0x1d8   :  { %205 = vsyncpa [#allocation3], 1 }

</bundles_post_ra>
